<compile_context>
chip_gen: v6e
topology: v6e:2x2x1
jax: 0.10.0
libtpu: 0.0.40
codegen_flags: <defaults>
</compile_context>

<pallas_src>
import functools

import jax
import jax.numpy as jnp
from jax import lax
from jax.experimental import pallas as pl
from jax.experimental.pallas import tpu as pltpu

KERNEL_SIZE = 3  # TODO(synk): module also allows kernel_size=7 (pad=3); only 3 implemented.
PAD = 1


def _spatial_attention_kernel(w_ref, x_ref, o_ref, s_ref, m_ref, *,
                              W, C_total, c_chunk):
    # w_ref : (18,) f32 SMEM  -- conv weight (out=1, in=2, kh=3, kw=3), row-major
    # x_ref : (Nb, Cb, HWp)   -- VMEM input block (lane-dense padded spatial dim)
    # o_ref : (Nb, 1, HWp)    -- VMEM output block (same block for every c step)
    # s_ref / m_ref : (Nb, HWp) f32 VMEM scratch -- running channel sum / max
    Nb, Cb, HWp = x_ref.shape
    c_idx = pl.program_id(1)
    n_chunks = Cb // c_chunk            # c_chunk divides Cb (chosen in wrapper)

    @pl.when(c_idx == 0)
    def _init():
        s_ref[...] = jnp.zeros_like(s_ref)
        m_ref[...] = jnp.full_like(m_ref, -jnp.inf)

    # ---- fused single-pass channel mean + max over this channel block ------
    def body(i, carry):
        s, m = carry
        c0 = pl.multiple_of(i * c_chunk, c_chunk)
        blk = x_ref[:, pl.ds(c0, c_chunk), :].astype(jnp.float32)   # (Nb,cc,HWp)
        return s + jnp.sum(blk, axis=1), jnp.maximum(m, jnp.max(blk, axis=1))

    s, m = lax.fori_loop(0, n_chunks, body, (s_ref[...], m_ref[...]),
                         unroll=min(n_chunks, 8))
    s_ref[...] = s
    m_ref[...] = m

    # ---- finalize on the last channel step: 3x3 "same" conv + sigmoid ------
    @pl.when(c_idx == pl.num_programs(1) - 1)
    def _finalize():
        avg = s * (1.0 / C_total)                  # (Nb, HWp) channel mean
        mx = m                                     # (Nb, HWp) channel max

        # Border masks: one (1, HWp) row, broadcast over Nb by jnp.where.
        col = lax.broadcasted_iota(jnp.int32, (1, HWp), 1) % W
        not_first_col = col != 0                   # reading (h, w-1) is valid
        not_last_col = col != (W - 1)              # reading (h, w+1) is valid

        zlane = jnp.zeros((Nb, 1), jnp.float32)
        zrow = jnp.zeros((Nb, W), jnp.float32)

        def col_m1(p):   # value at (h, w-1); zero at w == 0
            return jnp.where(not_first_col,
                             jnp.concatenate([zlane, p[:, :HWp - 1]], axis=1),
                             0.0)

        def col_p1(p):   # value at (h, w+1); zero at w == W-1
            return jnp.where(not_last_col,
                             jnp.concatenate([p[:, 1:], zlane], axis=1),
                             0.0)

        # kw-indexed column-shifted copies of BOTH planes, built once, then
        # combined per kh BEFORE the vertical shift: 4 column + 2 row shifted
        # slabs total (vs 16 with the naive nested-shift formulation).
        planes = ((col_m1(avg), col_m1(mx)),       # kw = 0  (reads w-1)
                  (avg, mx),                       # kw = 1
                  (col_p1(avg), col_p1(mx)))       # kw = 2  (reads w+1)

        def row_combo(kh):
            a0, m0 = planes[0]
            t = w_ref[kh * 3 + 0] * a0 + w_ref[9 + kh * 3 + 0] * m0
            for kw in (1, 2):
                a_p, m_p = planes[kw]
                t = t + w_ref[kh * 3 + kw] * a_p + w_ref[9 + kh * 3 + kw] * m_p
            return t

        t0, t1, t2 = row_combo(0), row_combo(1), row_combo(2)

        # kh = 0 reads row h-1 (shift down by W, zero-fill the first row);
        # kh = 2 reads row h+1 (shift up by W; the zero spatial padding and the
        # appended zero row give the "same"-padding zeros at the bottom edge).
        acc = (jnp.concatenate([zrow, t0[:, :HWp - W]], axis=1)
               + t1
               + jnp.concatenate([t2[:, W:], zrow], axis=1))

        # Single lane-dense, unmasked store of the sigmoid slab.
        o_ref[:, 0, :] = jax.nn.sigmoid(acc).astype(o_ref.dtype)


def spatial_attention(x, conv_weight):
    """x: (N, C, H, W); conv_weight: (1, 2, 3, 3), no bias. Returns (N, 1, H, W)."""
    N, C, H, W = x.shape
    HW = H * W
    HWp = ((HW + 127) // 128) * 128          # lane-dense padded spatial dim
    itemsize = x.dtype.itemsize

    x_flat = x.reshape(N, C, HW)             # free view (NCHW contiguous)
    if HWp != HW:
        # Zero padding keeps avg/max == 0 in the padded region, which is what
        # the flat +-W vertical shifts rely on for "same" conv semantics.
        x_flat = jnp.pad(x_flat, ((0, 0), (0, 0), (0, HWp - HW)))
    w_flat = conv_weight.reshape(-1).astype(jnp.float32)          # (18,)

    # ---- chip-aware block sizing (kernel is HBM-bandwidth-bound) -----------
    try:
        info = pltpu.get_tpu_info()
        vmem_phys = getattr(info, "vmem_capacity_bytes", None) or (128 << 20)
    except Exception:                         # info unavailable -> safe default
        vmem_phys = 128 << 20
    if vmem_phys <= (64 << 20):               # v7x-class: 64 MiB VMEM per core
        target_block_bytes = 6 << 20
        vmem_limit_bytes = 40 << 20
    else:                                     # v5e / v6e: 128 MiB VMEM
        target_block_bytes = 14 << 20
        vmem_limit_bytes = 64 << 20

    channel_bytes = HWp * itemsize
    sample_bytes = C * channel_bytes

    if sample_bytes <= target_block_bytes:
        # Whole channel dim per step; batch several samples per block.
        c_block = C
        nb = max(1, min(N, target_block_bytes // max(1, sample_bytes)))
    else:
        # Stream the channel dim: inner "arbitrary" C grid axis with running
        # sum/max scratch (large-C samples never blow the block / VMEM budget).
        nb = 1
        c_cap = max(8, int(target_block_bytes // max(1, channel_bytes)))
        c_block = C                           # fallback (C not a multiple of 8)
        d = (min(C, c_cap) // 8) * 8
        while d >= 8:
            if C % d == 0:
                c_block = d
                break
            d -= 8
        # TODO(synk): a masked tail channel block would be needed for huge C
        # that is not a multiple of 8; realistic CBAM channel counts are.

    # Cap nb so the f32 reduction/conv working set (scratch + ~12 temporaries)
    # stays comfortably inside VMEM next to the double-buffered input blocks.
    nb = max(1, min(nb, (8 << 20) // max(1, 16 * HWp * 4)))
    # Keep >= 2 batch grid steps so the "parallel" axis can split across the
    # two TensorCores on v7x-class chips (negligible cost elsewhere).
    if N >= 2:
        nb = min(nb, pl.cdiv(N, 2))

    grid = (pl.cdiv(N, nb), pl.cdiv(C, c_block))

    # Channel-chunk size for the fused mean/max pass (must divide c_block).
    c_chunk = min(c_block, 32)
    while c_block % c_chunk:
        c_chunk -= 1

    kernel = functools.partial(_spatial_attention_kernel, W=W, C_total=C,
                               c_chunk=c_chunk)

    cost = pl.CostEstimate(
        flops=int(N * HWp * (2 * C + 24)),
        transcendentals=int(N * HWp),
        bytes_accessed=int(N * C * HWp * itemsize + N * HWp * itemsize + 18 * 4))

    out_flat = pl.pallas_call(
        kernel,
        out_shape=jax.ShapeDtypeStruct((N, 1, HWp), x.dtype),
        grid=grid,
        in_specs=[
            # conv weights: tiny, scalar-indexed -> whole array in SMEM
            pl.BlockSpec(memory_space=pltpu.MemorySpace.SMEM),
            # (nb batch, c_block channels) per grid step, lane-dense last dim
            pl.BlockSpec((nb, c_block, HWp), lambda n, c: (n, c, 0)),
        ],
        out_specs=pl.BlockSpec((nb, 1, HWp), lambda n, c: (n, 0, 0)),
        scratch_shapes=[
            pltpu.VMEM((nb, HWp), jnp.float32),   # running channel sum
            pltpu.VMEM((nb, HWp), jnp.float32),   # running channel max
        ],
        compiler_params=pltpu.CompilerParams(
            dimension_semantics=("parallel", "arbitrary"),
            vmem_limit_bytes=vmem_limit_bytes),
        cost_estimate=cost,
    )(w_flat, x_flat)

    out = out_flat[:, :, :HW] if HWp != HW else out_flat
    return out.reshape(N, 1, H, W)


def _reference(x, conv_weight):
    """Pure-JAX reference matching the PyTorch forward."""
    avg = jnp.mean(x, axis=1, keepdims=True)
    mx = jnp.max(x, axis=1, keepdims=True)
    cat = jnp.concatenate([avg, mx], axis=1)                # (N, 2, H, W)
    y = jax.lax.conv_general_dilated(
        cat, conv_weight, window_strides=(1, 1),
        padding=((PAD, PAD), (PAD, PAD)),
        dimension_numbers=("NCHW", "OIHW", "NCHW"))
    return jax.nn.sigmoid(y)


if __name__ == "__main__":
    key = jax.random.PRNGKey(0)
    kx, kw = jax.random.split(key)

    N, C, H, W = 2, 4, 16, 16
    x = jax.random.normal(kx, (N, C, H, W), dtype=jnp.float32)
    # Deterministic synthetic init for convsa weight (1 out ch, 2 in ch, 3x3, no bias).
    conv_weight = jax.random.normal(kw, (1, 2, KERNEL_SIZE, KERNEL_SIZE),
                                    dtype=jnp.float32) * 0.3

    out = jax.block_until_ready(spatial_attention(x, conv_weight))
    ref = jax.block_until_ready(_reference(x, conv_weight))

    assert out.shape == (N, 1, H, W)
    assert jnp.allclose(out, ref, atol=1e-5, rtol=1e-5), "mismatch vs reference"

    print("KERNEL_OK")
</pallas_src>

<mosaic_0001>
module attributes {stable_mosaic.version = 11 : i64} {
  func.func @_spatial_attention_kernel(%arg0: i32, %arg1: i32, %arg2: memref<18xf32, #tpu.memory_space<smem>>, %arg3: memref<1x4x256xf32, #tpu.memory_space<vmem>>, %arg4: memref<1x1x256xf32, #tpu.memory_space<vmem>>, %arg5: memref<1x256xf32, #tpu.memory_space<vmem>>, %arg6: memref<1x256xf32, #tpu.memory_space<vmem>>) attributes {dimension_semantics = [#tpu.dimension_semantics<parallel>, #tpu.dimension_semantics<arbitrary>], iteration_bounds = array<i64: 2, 1>, scalar_prefetch = 0 : i64, scratch_operands = 2 : i64, tpu.core_type = #tpu.core_type<tc>, window_params = [{transform_indices = @transform_0, window_bounds = array<i64: 18>}, {transform_indices = @transform_1, window_bounds = array<i64: 1, 4, 256>}, {transform_indices = @transform_2, window_bounds = array<i64: 1, 1, 256>}]} {
    %c0_i32 = arith.constant 0 : i32
    %0 = arith.cmpi eq, %arg1, %c0_i32 : i32
    %1 = arith.extui %0 : i1 to i32
    %c0_i32_0 = arith.constant 0 : i32
    %2 = arith.cmpi ne, %1, %c0_i32_0 : i32
    scf.if %2 {
      %cst_14 = arith.constant 0.000000e+00 : f32
      %18 = vector.broadcast %cst_14 : f32 to vector<1x256xf32>
      %c0_15 = arith.constant 0 : index
      %c0_16 = arith.constant 0 : index
      %19 = vector.load %arg5[%c0_15, %c0_16] : memref<1x256xf32, #tpu.memory_space<vmem>>, vector<1x256xf32>
      tpu.vector_store %arg5[%c0_15, %c0_16], %18 {strides = array<i32>} : memref<1x256xf32, #tpu.memory_space<vmem>>, vector<1x256xf32>,
      %cst_17 = arith.constant 0xFF800000 : f32
      %20 = vector.broadcast %cst_17 : f32 to vector<1x256xf32>
      %c0_18 = arith.constant 0 : index
      %c0_19 = arith.constant 0 : index
      %21 = vector.load %arg6[%c0_18, %c0_19] : memref<1x256xf32, #tpu.memory_space<vmem>>, vector<1x256xf32>
      tpu.vector_store %arg6[%c0_18, %c0_19], %20 {strides = array<i32>} : memref<1x256xf32, #tpu.memory_space<vmem>>, vector<1x256xf32>,
    } else {
    }
    %c0 = arith.constant 0 : index
    %c0_1 = arith.constant 0 : index
    %3 = vector.load %arg5[%c0, %c0_1] : memref<1x256xf32, #tpu.memory_space<vmem>>, vector<1x256xf32>
    %c0_2 = arith.constant 0 : index
    %c0_3 = arith.constant 0 : index
    %4 = vector.load %arg6[%c0_2, %c0_3] : memref<1x256xf32, #tpu.memory_space<vmem>>, vector<1x256xf32>
    %c0_i32_4 = arith.constant 0 : i32
    %c4_i32 = arith.constant 4 : i32
    %5 = arith.muli %c0_i32_4, %c4_i32 : i32
    %6 = tpu.assume_multiple %5, 4 : i32
    %c0_5 = arith.constant 0 : index
    %7 = arith.index_cast %6 : i32 to index
    %c0_6 = arith.constant 0 : index
    %8 = vector.load %arg3[%c0_5, %7, %c0_6] : memref<1x4x256xf32, #tpu.memory_space<vmem>>, vector<1x4x256xf32>
    %cst = arith.constant dense<0.000000e+00> : vector<1x256xf32>
    %9 = vector.multi_reduction <add>, %8, %cst [1] : vector<1x4x256xf32> to vector<1x256xf32>
    %10 = arith.addf %3, %9 : vector<1x256xf32>
    %cst_7 = arith.constant dense<0xFF800000> : vector<1x256xf32>
    %11 = vector.multi_reduction <maximumf>, %8, %cst_7 [1] : vector<1x4x256xf32> to vector<1x256xf32>
    %12 = arith.maximumf %4, %11 : vector<1x256xf32>
    %c1_i32 = arith.constant 1 : i32
    %c0_8 = arith.constant 0 : index
    %c0_9 = arith.constant 0 : index
    %13 = vector.load %arg5[%c0_8, %c0_9] : memref<1x256xf32, #tpu.memory_space<vmem>>, vector<1x256xf32>
    tpu.vector_store %arg5[%c0_8, %c0_9], %10 {strides = array<i32>} : memref<1x256xf32, #tpu.memory_space<vmem>>, vector<1x256xf32>,
    %c0_10 = arith.constant 0 : index
    %c0_11 = arith.constant 0 : index
    %14 = vector.load %arg6[%c0_10, %c0_11] : memref<1x256xf32, #tpu.memory_space<vmem>>, vector<1x256xf32>
    tpu.vector_store %arg6[%c0_10, %c0_11], %12 {strides = array<i32>} : memref<1x256xf32, #tpu.memory_space<vmem>>, vector<1x256xf32>,
    %c0_i32_12 = arith.constant 0 : i32
    %15 = arith.cmpi eq, %arg1, %c0_i32_12 : i32
    %16 = arith.extui %15 : i1 to i32
    %c0_i32_13 = arith.constant 0 : i32
    %17 = arith.cmpi ne, %16, %c0_i32_13 : i32
    scf.if %17 {
      %cst_14 = arith.constant 2.500000e-01 : f32
      %18 = vector.broadcast %cst_14 : f32 to vector<1x256xf32>
      %19 = arith.mulf %10, %18 : vector<1x256xf32>
      %20 = tpu.iota {dimensions = array<i32: 1>} : vector<1x256xi32>
      %c16_i32 = arith.constant 16 : i32
      %c0_i32_15 = arith.constant 0 : i32
      %21 = arith.cmpi eq, %c16_i32, %c0_i32_15 : i32
      %c1_i32_16 = arith.constant 1 : i32
      %22 = arith.select %21, %c1_i32_16, %c16_i32 : i32
      %23 = vector.broadcast %22 : i32 to vector<1x256xi32>
      %24 = arith.remsi %20, %23 : vector<1x256xi32>
      %c0_i32_17 = arith.constant 0 : i32
      %25 = vector.broadcast %c0_i32_17 : i32 to vector<1x256xi32>
      %26 = arith.cmpi ne, %24, %25 : vector<1x256xi32>
      %c0_i32_18 = arith.constant 0 : i32
      %27 = vector.broadcast %c0_i32_18 : i32 to vector<1x256xi32>
      %28 = arith.cmpi slt, %24, %27 : vector<1x256xi32>
      %c0_i32_19 = arith.constant 0 : i32
      %29 = arith.cmpi slt, %22, %c0_i32_19 : i32
      %30 = vector.broadcast %29 : i1 to vector<1x256xi1>
      %31 = vector.broadcast %30 : vector<1x256xi1> to vector<1x256xi1>
      %32 = arith.xori %28, %31 : vector<1x256xi1>
      %33 = arith.andi %32, %26 : vector<1x256xi1>
      %34 = vector.broadcast %22 : i32 to vector<1x256xi32>
      %35 = arith.addi %24, %34 : vector<1x256xi32>
      %36 = arith.select %33, %35, %24 : vector<1x256xi1>, vector<1x256xi32>
      %c0_i32_20 = arith.constant 0 : i32
      %37 = vector.broadcast %c0_i32_20 : i32 to vector<1x256xi32>
      %38 = arith.cmpi ne, %36, %37 : vector<1x256xi32>
      %c15_i32 = arith.constant 15 : i32
      %39 = vector.broadcast %c15_i32 : i32 to vector<1x256xi32>
      %40 = arith.cmpi ne, %36, %39 : vector<1x256xi32>
      %cst_21 = arith.constant 0.000000e+00 : f32
      %41 = vector.broadcast %cst_21 : f32 to vector<1x1xf32>
      %cst_22 = arith.constant 0.000000e+00 : f32
      %42 = vector.broadcast %cst_22 : f32 to vector<1x16xf32>
      %43 = vector.extract_strided_slice %19 {offsets = [0, 0], sizes = [1, 255], strides = [1, 1]} : vector<1x256xf32> to vector<1x255xf32>
      %44 = tpu.concatenate %41, %43 in 1 : vector<1x1xf32>, vector<1x255xf32> -> vector<1x256xf32>
      %cst_23 = arith.constant 0.000000e+00 : f32
      %45 = vector.broadcast %cst_23 : f32 to vector<1x256xf32>
      %46 = arith.select %38, %44, %45 : vector<1x256xi1>, vector<1x256xf32>
      %47 = vector.extract_strided_slice %12 {offsets = [0, 0], sizes = [1, 255], strides = [1, 1]} : vector<1x256xf32> to vector<1x255xf32>
      %48 = tpu.concatenate %41, %47 in 1 : vector<1x1xf32>, vector<1x255xf32> -> vector<1x256xf32>
      %cst_24 = arith.constant 0.000000e+00 : f32
      %49 = vector.broadcast %cst_24 : f32 to vector<1x256xf32>
      %50 = arith.select %38, %48, %49 : vector<1x256xi1>, vector<1x256xf32>
      %51 = vector.extract_strided_slice %19 {offsets = [0, 1], sizes = [1, 255], strides = [1, 1]} : vector<1x256xf32> to vector<1x255xf32>
      %52 = tpu.concatenate %51, %41 in 1 : vector<1x255xf32>, vector<1x1xf32> -> vector<1x256xf32>
      %cst_25 = arith.constant 0.000000e+00 : f32
      %53 = vector.broadcast %cst_25 : f32 to vector<1x256xf32>
      %54 = arith.select %40, %52, %53 : vector<1x256xi1>, vector<1x256xf32>
      %55 = vector.extract_strided_slice %12 {offsets = [0, 1], sizes = [1, 255], strides = [1, 1]} : vector<1x256xf32> to vector<1x255xf32>
      %56 = tpu.concatenate %55, %41 in 1 : vector<1x255xf32>, vector<1x1xf32> -> vector<1x256xf32>
      %cst_26 = arith.constant 0.000000e+00 : f32
      %57 = vector.broadcast %cst_26 : f32 to vector<1x256xf32>
      %58 = arith.select %40, %56, %57 : vector<1x256xi1>, vector<1x256xf32>
      %c0_27 = arith.constant 0 : index
      %59 = memref.load %arg2[%c0_27] : memref<18xf32, #tpu.memory_space<smem>>
      %60 = vector.broadcast %59 : f32 to vector<1x256xf32>
      %61 = arith.mulf %60, %46 : vector<1x256xf32>
      %c9 = arith.constant 9 : index
      %62 = memref.load %arg2[%c9] : memref<18xf32, #tpu.memory_space<smem>>
      %63 = vector.broadcast %62 : f32 to vector<1x256xf32>
      %64 = arith.mulf %63, %50 : vector<1x256xf32>
      %65 = arith.addf %61, %64 : vector<1x256xf32>
      %c1 = arith.constant 1 : index
      %66 = memref.load %arg2[%c1] : memref<18xf32, #tpu.memory_space<smem>>
      %67 = vector.broadcast %66 : f32 to vector<1x256xf32>
      %68 = arith.mulf %67, %19 : vector<1x256xf32>
      %69 = arith.addf %65, %68 : vector<1x256xf32>
      %c10 = arith.constant 10 : index
      %70 = memref.load %arg2[%c10] : memref<18xf32, #tpu.memory_space<smem>>
      %71 = vector.broadcast %70 : f32 to vector<1x256xf32>
      %72 = arith.mulf %71, %12 : vector<1x256xf32>
      %73 = arith.addf %69, %72 : vector<1x256xf32>
      %c2 = arith.constant 2 : index
      %74 = memref.load %arg2[%c2] : memref<18xf32, #tpu.memory_space<smem>>
      %75 = vector.broadcast %74 : f32 to vector<1x256xf32>
      %76 = arith.mulf %75, %54 : vector<1x256xf32>
      %77 = arith.addf %73, %76 : vector<1x256xf32>
      %c11 = arith.constant 11 : index
      %78 = memref.load %arg2[%c11] : memref<18xf32, #tpu.memory_space<smem>>
      %79 = vector.broadcast %78 : f32 to vector<1x256xf32>
      %80 = arith.mulf %79, %58 : vector<1x256xf32>
      %81 = arith.addf %77, %80 : vector<1x256xf32>
      %c3 = arith.constant 3 : index
      %82 = memref.load %arg2[%c3] : memref<18xf32, #tpu.memory_space<smem>>
      %83 = vector.broadcast %82 : f32 to vector<1x256xf32>
      %84 = arith.mulf %83, %46 : vector<1x256xf32>
      %c12 = arith.constant 12 : index
      %85 = memref.load %arg2[%c12] : memref<18xf32, #tpu.memory_space<smem>>
      %86 = vector.broadcast %85 : f32 to vector<1x256xf32>
      %87 = arith.mulf %86, %50 : vector<1x256xf32>
      %88 = arith.addf %84, %87 : vector<1x256xf32>
      %c4 = arith.constant 4 : index
      %89 = memref.load %arg2[%c4] : memref<18xf32, #tpu.memory_space<smem>>
      %90 = vector.broadcast %89 : f32 to vector<1x256xf32>
      %91 = arith.mulf %90, %19 : vector<1x256xf32>
      %92 = arith.addf %88, %91 : vector<1x256xf32>
      %c13 = arith.constant 13 : index
      %93 = memref.load %arg2[%c13] : memref<18xf32, #tpu.memory_space<smem>>
      %94 = vector.broadcast %93 : f32 to vector<1x256xf32>
      %95 = arith.mulf %94, %12 : vector<1x256xf32>
      %96 = arith.addf %92, %95 : vector<1x256xf32>
      %c5 = arith.constant 5 : index
      %97 = memref.load %arg2[%c5] : memref<18xf32, #tpu.memory_space<smem>>
      %98 = vector.broadcast %97 : f32 to vector<1x256xf32>
      %99 = arith.mulf %98, %54 : vector<1x256xf32>
      %100 = arith.addf %96, %99 : vector<1x256xf32>
      %c14 = arith.constant 14 : index
      %101 = memref.load %arg2[%c14] : memref<18xf32, #tpu.memory_space<smem>>
      %102 = vector.broadcast %101 : f32 to vector<1x256xf32>
      %103 = arith.mulf %102, %58 : vector<1x256xf32>
      %104 = arith.addf %100, %103 : vector<1x256xf32>
      %c6 = arith.constant 6 : index
      %105 = memref.load %arg2[%c6] : memref<18xf32, #tpu.memory_space<smem>>
      %106 = vector.broadcast %105 : f32 to vector<1x256xf32>
      %107 = arith.mulf %106, %46 : vector<1x256xf32>
      %c15 = arith.constant 15 : index
      %108 = memref.load %arg2[%c15] : memref<18xf32, #tpu.memory_space<smem>>
      %109 = vector.broadcast %108 : f32 to vector<1x256xf32>
      %110 = arith.mulf %109, %50 : vector<1x256xf32>
      %111 = arith.addf %107, %110 : vector<1x256xf32>
      %c7 = arith.constant 7 : index
      %112 = memref.load %arg2[%c7] : memref<18xf32, #tpu.memory_space<smem>>
      %113 = vector.broadcast %112 : f32 to vector<1x256xf32>
      %114 = arith.mulf %113, %19 : vector<1x256xf32>
      %115 = arith.addf %111, %114 : vector<1x256xf32>
      %c16 = arith.constant 16 : index
      %116 = memref.load %arg2[%c16] : memref<18xf32, #tpu.memory_space<smem>>
      %117 = vector.broadcast %116 : f32 to vector<1x256xf32>
      %118 = arith.mulf %117, %12 : vector<1x256xf32>
      %119 = arith.addf %115, %118 : vector<1x256xf32>
      %c8 = arith.constant 8 : index
      %120 = memref.load %arg2[%c8] : memref<18xf32, #tpu.memory_space<smem>>
      %121 = vector.broadcast %120 : f32 to vector<1x256xf32>
      %122 = arith.mulf %121, %54 : vector<1x256xf32>
      %123 = arith.addf %119, %122 : vector<1x256xf32>
      %c17 = arith.constant 17 : index
      %124 = memref.load %arg2[%c17] : memref<18xf32, #tpu.memory_space<smem>>
      %125 = vector.broadcast %124 : f32 to vector<1x256xf32>
      %126 = arith.mulf %125, %58 : vector<1x256xf32>
      %127 = arith.addf %123, %126 : vector<1x256xf32>
      %128 = vector.extract_strided_slice %81 {offsets = [0, 0], sizes = [1, 240], strides = [1, 1]} : vector<1x256xf32> to vector<1x240xf32>
      %129 = tpu.concatenate %42, %128 in 1 : vector<1x16xf32>, vector<1x240xf32> -> vector<1x256xf32>
      %130 = arith.addf %129, %104 : vector<1x256xf32>
      %131 = vector.extract_strided_slice %127 {offsets = [0, 16], sizes = [1, 240], strides = [1, 1]} : vector<1x256xf32> to vector<1x240xf32>
      %132 = tpu.concatenate %131, %42 in 1 : vector<1x240xf32>, vector<1x16xf32> -> vector<1x256xf32>
      %133 = arith.addf %130, %132 : vector<1x256xf32>
      %134 = arith.negf %133 : vector<1x256xf32>
      %135 = math.exp %134 : vector<1x256xf32>
      %cst_28 = arith.constant 1.000000e+00 : f32
      %136 = vector.broadcast %cst_28 : f32 to vector<1x256xf32>
      %137 = arith.addf %136, %135 : vector<1x256xf32>
      %138 = arith.divf %136, %137 : vector<1x256xf32>
      %c0_29 = arith.constant 0 : index
      %c0_30 = arith.constant 0 : index
      %c0_31 = arith.constant 0 : index
      %139 = vector.load %arg4[%c0_29, %c0_30, %c0_31] : memref<1x1x256xf32, #tpu.memory_space<vmem>>, vector<1x1x256xf32>
      %140 = vector.shape_cast %139 : vector<1x1x256xf32> to vector<1x256xf32>
      %141 = vector.shape_cast %138 : vector<1x256xf32> to vector<1x1x256xf32>
      tpu.vector_store %arg4[%c0_29, %c0_30, %c0_31], %141 {strides = array<i32>} : memref<1x1x256xf32, #tpu.memory_space<vmem>>, vector<1x1x256xf32>,
    } else {
    }
    return
  }
  func.func @transform_0(%arg0: i32, %arg1: i32) -> i32 {
    %c0_i32 = arith.constant 0 : i32
    %c0_i32_0 = arith.constant 0 : i32
    return %c0_i32 : i32
  }
  func.func @transform_1(%arg0: i32, %arg1: i32) -> (i32, i32, i32) {
    %c0_i32 = arith.constant 0 : i32
    %c0_i32_0 = arith.constant 0 : i32
    return %arg0, %arg1, %c0_i32 : i32, i32, i32
  }
  func.func @transform_2(%arg0: i32, %arg1: i32) -> (i32, i32, i32) {
    %c0_i32 = arith.constant 0 : i32
    %c0_i32_0 = arith.constant 0 : i32
    %c0_i32_1 = arith.constant 0 : i32
    return %arg0, %c0_i32, %c0_i32_0 : i32, i32, i32
  }
}

</mosaic_0001>

<bundles_post_ra>
// kernel: tpu_custom_call.1
= control target key start
LH: loop header
LB: loop body
LE: loop exit
PB: predicated region body
PF: predicated region fallthrough
CT: control target
= control target key end

     0   :  { %7 = vsyncpa [#allocation7], 0  ;;  %s1335_s0 = inlined_call_operand.hbm [shape: f32[18], index: 0, kind: input, shape index: {}]   ;;  %s1336_s1 = inlined_call_operand.hbm [shape: f32[2,4,256], index: 1, kind: input, shape index: {}]   ;;  %s1337_s2 = inlined_call_operand.hbm [shape: f32[2,1,256], index: 2, kind: output, shape index: {}]  }
   0x1   :  { %8 = vsyncpa [#allocation5], 0 }
   0x2   :  { %10 = vsyncpa [#allocation5 + $0x1], 0 }
   0x3   :  { %11 = vsyncpa [#allocation6], 0 }
   0x4   :  { %13 = vsyncpa [#allocation6 + $0x1], 0  ;;  %s979_s9 = smov 0   ;;  %s981_s10 = smov 0  }
   0x5   :  { %s983_s11 = smov 0   ;;  %s985_s12 = smov 0  }
   0x6   :  { %s987_s13 = smov 0   ;;  %s989_s14 = smov 0  }
   0x7 LB: > { %s702_s15 = sadd.s32 4294967295, %s952_s14   ;;  %s703_s16 = sadd.s32 4294967294, %s952_s14   ;;  %s952_s14 = sphi %s989_s14, %s19_s14   ;;  %s948_s13 = sphi %s987_s13, %s1364_s13   ;;  %s944_s12 = sphi %s985_s12, %s1363_s12   ;;  %s940_s11 = sphi %s983_s11, %s1362_s11   ;;  %s936_s10 = sphi %s981_s10, %s1361_s10   ;;  %s932_s9 = sphi %s979_s9, %s1360_s9  }
   0x8   : > { %p74_p0 = scmp.ne.s32.totalorder %s936_s10, %s932_s9  ;;  %p1013_p1 = scmp.eq.s32.totalorder %s702_s15, 0 }
   0x9   : > { %p1017_p2 = scmp.eq.s32.totalorder %s702_s15, 1  ;;  %p104_p3 = scmp.eq.s32.totalorder %s703_s16, 1 }
   0xa   : > { %p1023_p4 = por %p1013_p1, %p74_p0  ;;  %p704_p5 = scmp.ge.s32.totalorder %s952_s14, 1 }
   0xb   : > { %p1028_p6 = por %p104_p3, %p74_p0  ;;  %p111_p7 = scmp.lt.s32.totalorder %s952_s14, 3 }
   0xc   : > { %s31_s22 = sadd.s32 1, %s948_s13  ;;  %s61_s23 = sadd.s32 1, %s940_s11 }
   0xd   : > { %s1342_s20 = scalar_select %p1028_p6, 1, 0 }
   0xe   : > { %p1033_p8 = pnand %p704_p5, %p111_p7  ;;  %p33_p12 = scmp.ge.s32.totalorder %s31_s22, 2 }
   0xf   : > { %p68_p13 = scmp.ne.s32.totalorder %s940_s11, %s936_s10  ;;  %p69_p0 = scmp.eq.s32.totalorder %s952_s14, 0 }
  0x10   : > { %p748_p10 = pneg %p1033_p8  ;;  %s954_s24 = smov [#allocation4]  }
  0x11   : > { %s1366_s22 = smov (%p33_p12, %s31_s22), 0  ;;  %p1052_p3 = por %p69_p0, %p68_p13 }
  0x12   : > { %p749_p11 = pnand %p748_p10, %p1013_p1  ;;  %p1058_p5 = por %p1017_p2, %p68_p13 }
  0x13   : > { %s56_s29 = ssub.s32 %s948_s13, %s1366_s22  ;;  %p761_p7 = scmp.lt.s32.totalorder %s952_s14, 2 }
  0x14   : > { %751 = dma.hbm_to_smem (!%p749_p11), %s1335_s0, 16, %s954_s24, [#allocation7]  }
  0x15   : > { %s1345_s28 = scalar_select %p1058_p5, 1, 0 }
  0x16   : > { %p59_p10 = scmp.eq.s32.totalorder %s56_s29, 0  ;;  %s133_s30 = sand.u32 1, %s940_s11  }
  0x17   : > { %s707_s3 = sshll.u32 %s133_s30, 3  ;;  %s738_s5 = sshll.u32 %s948_s13, 7 }
  0x18   : > { %s1067_s4 = scalar_select %p59_p10, %s940_s11, %s61_s23  }
  0x19   : > { %s145_s8 = scalar_lea.hbm %s1336_s1, %s738_s5  ;;  %s137_s15 = scalar_lea.vmem [#allocation8], %s707_s3 }
  0x1a   : > { %s147_s16 = sshll.u32 %s137_s15, 4  ;;  %p1075_p2 = pnand %p761_p7, %p1052_p3  ;;  %s148_s16 = int_to_ptr.vmem [resolvable:$true] %s147_s16 }
  0x1b   : > { %s134_s24 = scalar_lea.sflag [#allocation5], %s133_s30  ;;  %s853_s25 = scalar_lea.vmem %s148_s16, 128 }
  0x1c   : > { %p842_p11 = pneg %p1075_p2  ;;  %p854_p12 = scmp.ne.s32.totalorder %s148_s16, %s853_s25 }
  0x1d   : > { %s955_s23 = smov [#allocation8]  }
  0x1e   : > { %p856_p13 = pnand %p854_p12, %p842_p11  ;;  %s858_s26 = sshll.u32 %s955_s23, 4  ;;  %s859_s26 = int_to_ptr.vmem [resolvable:$false] %s858_s26 }
  0x1f   : > { %s860_s29 = scalar_lea.vmem %s859_s26, 256  ;;  %p861_p10 = scmp.lt.s32.totalorder %s148_s16, %s859_s26 }
  0x20   : > { %p857_p0 = pneg %p856_p13  ;;  %p862_p9 = scmp.lt.s32.totalorder %s860_s29, %s853_s25 }
  0x22   : > { %p863_p6 = por %p862_p9, %p861_p10 }
  0x24   : > { %p864_p5 = pnand %p863_p6, %p857_p0 }
  0x26   : > { %867 = shalt.err (!%p864_p5)
}
  0x27   : > { %755 = dma.hbm_to_vmem [thread:$0]  (!%p1075_p2), %s145_s8, 128, %s148_s16, %s134_s24  }
  0x28   : > { %156 = sbr.rel (%p1033_p8) target bundleno = 389 (0x185), region = 28 }
  0x2d   : > { %919 = dma.done.wait (%p1013_p1), [#allocation7], 16  }
  0x2e   : > { %921 = vsyncadd (%p1013_p1), [#allocation7], 4294967280  ;;  %s1090_s27 = sand.u32 1, %s936_s10  }
  0x2f   : > { %s712_s30 = sshll.u32 %s1090_s27, 3  ;;  %s163_s3 = scalar_lea.sflag [#allocation5], %s1090_s27 }
  0x30   : > { %s166_s5 = scalar_lea.vmem [#allocation8], %s712_s30 }
  0x31   : > { %923 = dma.done.wait (%p1023_p4), %s163_s3, 128  }
  0x32   : > { %925 = vsyncadd (%p1023_p4), %s163_s3, 4294967168 }
  0x33   : > { %171 = sfence }
  0x34   : > { %v192_v0 = vlaneseq  ;;  %v203_v1 = vld [vmem:[%s166_s5] sm:$0xff]  ;;  %vm207_vm0 = vcmask 1043456   ;;  %v956_v7 = vmov -inf   ;;  %v957_v9 = vmov 0.0   ;;  %s1110_s17 = sld [smem:[#allocation4 + $0x1]]  ;;  %s959_s15 = smov 1  }
  0x35   : > { %v205_v2 = vcombine.high %v203_v1, %v203_v1  ;;  %v241_v3 = vsel %vm207_vm0, %v203_v1, -inf  ;;  %v208_v6 = vsel %vm207_vm0, %v203_v1, 0.0  ;;  %v958_v16 = vmov 1966171168   ;;  %s1112_s19 = sld [smem:[#allocation4 + $0x4]]  ;;  %s960_s16 = smov 127  }
  0x36   : > { %vm1099_vm1 = vcmp.lt.s32.totalorder %v192_v0, 256  ;;  %v242_v5 = vrot.slane %v241_v3, 4  ;;  %v209_v10 = vrot.slane %v208_v6, 4  ;;  %v226_v17 = vunpack.c.l.s4 %v958_v16  ;;  %s1114_s21 = sld [smem:[#allocation4 + $0x7]]  ;;  %p1357_p4 = scmp.ne.s32.totalorder %s1345_s28, 0 }
  0x37   : > { %197 = vst.msk [vmem:[#allocation3] sm:$0x3] %vm1099_vm1, %v956_v7  ;;  %v248_v8 = vsel %vm207_vm0, %v205_v2, -inf  ;;  %196 = vst.msk [vmem:[#allocation2] sm:$0x3] %vm1099_vm1, %v957_v9  ;;  %v215_v11 = vsel %vm207_vm0, %v205_v2, 0.0 }
  0x38   : > { %v243_v12 = vmax.f32 %v241_v3, %v242_v5  ;;  %v249_v13 = vrot.slane %v248_v8, 4  ;;  %v216_v14 = vrot.slane %v215_v11, 4  ;;  %v210_v15 = vadd.f32 %v209_v10, %v208_v6  ;;  %s716_s6 = sld [smem:[#allocation4 + $0xa]] }
  0x39   : > { %v229_v25 = vshrl.u32 %v192_v0, 7  ;;  %v227_v27 = vunpack.c.0.s8 %v226_v17  ;;  %s1118_s7 = sld [smem:[#allocation4 + $0x10]]  ;;  %vm328_vm2 = vcmask 7168   ;;  %vm358_vm6 = vcmask 1039360  }
  0x3a   : > { %v244_v18 = vrot.slane %v243_v12, 2  ;;  %v250_v19 = vmax.f32 %v248_v8, %v249_v13  ;;  %v217_v20 = vadd.f32 %v216_v14, %v215_v11  ;;  %v211_v21 = vrot.slane %v210_v15, 2  ;;  %s1126_s8 = sld [smem:[#allocation4 + $0xd]] }
  0x3b   : > { %v1108_v36 = vsub.s32 %v227_v27, %v229_v25  ;;  %v1121_v46 = vsub.s32 0, %v229_v25  ;;  %v1124_v48 = vsub.s32 1, %v229_v25  ;;  %v386_v51 = vstv %s1110_s17  ;;  %s1177_s18 = sld [smem:[#allocation4 + $0x9]] }
  0x3c   : > { %v245_v22 = vmax.f32 %v243_v12, %v244_v18  ;;  %v251_v23 = vrot.slane %v250_v19, 2  ;;  %v218_v24 = vrot.slane %v217_v20, 2  ;;  %v212_v26 = vadd.f32 %v211_v21, %v210_v15  ;;  %s1180_s24 = sld [smem:[#allocation4 + $0xc]] }
  0x3d   : > { %v440_v52 = vstv %s1112_s19  ;;  %v494_v56 = vstv %s1114_s21  ;;  %v285_v18 = vand.u32 127, %v192_v0  ;;  %s1182_s25 = sld [smem:[#allocation4 + $0xf]]  ;;  %vm543_vm8 = vcmask 130048  }
  0x3e   : > { %v246_v28 = vrot.slane %v245_v22, 1  ;;  %v252_v29 = vmax.f32 %v250_v19, %v251_v23  ;;  %v219_v30 = vadd.f32 %v218_v24, %v217_v20  ;;  %v213_v31 = vrot.slane %v212_v26, 1  ;;  %v199_v43 = vld [vmem:[#allocation3] sm:$0x3]  ;;  %v198_v44 = vld [vmem:[#allocation2] sm:$0x3] }
  0x3f   : > { %v402_v53 = vstv %s716_s6  ;;  %v510_v62 = vstv %s1118_s7  ;;  %s1184_s23 = sld [smem:[#allocation4]]  ;;  %v286_v19 = vadd.s32 128, %v285_v18  ;;  %v291_v20 = vand.u32 15, %v285_v18  ;;  %s961_s6 = smov 16  }
  0x40   : > { %v247_v32 = vmax.f32 %v245_v22, %v246_v28  ;;  %v253_v33 = vrot.slane %v252_v29, 1  ;;  %v220_v34 = vrot.slane %v219_v30, 1  ;;  %v214_v35 = vadd.f32 %v213_v31, %v212_v26  ;;  %s1186_s26 = sld [smem:[#allocation4 + $0x3]]  ;;  %s962_s7 = smov 112  }
  0x41   : > { %v456_v12 = vstv %s1126_s8  ;;  %s1188_s29 = sld [smem:[#allocation4 + $0x6]]  ;;  %v298_v0 = vand.u32 15, %v286_v19  ;;  %vm1196_vm3 = vcmp.ne.s32.totalorder %v291_v20, 0  ;;  %v380_v22 = vstv %s1177_s18  ;;  %s713_s8 = sshll.u32 %s1090_s27, 1 }
  0x42   : > { %v254_v37 = vmax.f32 %v252_v29, %v253_v33  ;;  %v221_v38 = vadd.f32 %v220_v34, %v219_v30  ;;  %s1190_s30 = sld [smem:[#allocation4 + $0x2]]  ;;  %v434_v23 = vstv %s1180_s24  ;;  %vm1232_vm7 = vcmp.ne.s32.totalorder %v291_v20, 15 }
  0x43   : > { %s1192_s3 = sld [smem:[#allocation4 + $0x5]]  ;;  %v488_v24 = vstv %s1182_s25  ;;  %vm1211_vm4 = vcmp.ne.s32.totalorder %v298_v0, 0  ;;  %vm1218_vm5 = vcmp.ne.s32.totalorder %v298_v0, 15  ;;  %vm556_vm9 = vcmask 916480  }
  0x44   : > { %v257_v39 = vcombine.low %v247_v32, %v254_v37  ;;  %v224_v40 = vcombine.low %v214_v35, %v221_v38  ;;  %s1194_s5 = sld [smem:[#allocation4 + $0x8]] }
  0x45   : > { %s1200_s17 = sld [smem:[#allocation4 + $0xb]]  ;;  %v376_v27 = vstv %s1184_s23 }
  0x46   : > { %v264_v41 = vrot.slane %v257_v39, %v1108_v36  ;;  %v231_v42 = vrot.slane %v224_v40, %v1108_v36  ;;  %v430_v29 = vstv %s1186_s26  ;;  %s1223_s19 = sld [smem:[#allocation4 + $0xe]]  ;;  %s595_s26 = scalar_lea.sflag [#allocation6], %s1090_s27 }
  0x47   : > { %v484_v30 = vstv %s1188_s29  ;;  %s1226_s21 = sld [smem:[#allocation4 + $0x11]] }
  0x48   : > { %v271_v45 = vrot.slane %v264_v41, %v1108_v36  ;;  %v238_v47 = vrot.slane %v231_v42, %v1108_v36  ;;  %v418_v41 = vstv %s1190_s30 }
  0x4a   : > { %v273_v49 = vmax.f32 %v199_v43, %v271_v45  ;;  %v240_v50 = vadd.f32 %v238_v47, %v198_v44 }
  0x4c   : > { %v339_v54 = vrot.slane %v273_v49, %v1121_v46  ;;  %279 = vst.msk [vmem:[#allocation3] sm:$0x3] %vm1099_vm1, %v273_v49  ;;  %v283_v55 = vmul.f32 0.25, %v240_v50  ;;  %278 = vst.msk [vmem:[#allocation2] sm:$0x3] %vm1099_vm1, %v240_v50  ;;  %v343_v57 = vrot.slane %v273_v49, %v1124_v48  ;;  %v1137_v58 = vmul.f32 %v402_v53, %v273_v49 }
  0x4d   : > { %v1164_v11 = vmul.f32 %v510_v62, %v273_v49  ;;  %v1171_v15 = vmul.f32 %v456_v12, %v273_v49  ;;  %v472_v50 = vstv %s1192_s3 }
  0x4e   : > { %344 = vrot.lane.b32.xlu1 %v339_v54, %s959_s15  ;;  %v319_v59 = vrot.slane %v283_v55, %v1121_v46  ;;  %v1140_v60 = vmul.f32 %v386_v51, %v283_v55  ;;  %v1142_v61 = vmul.f32 %v440_v52, %v283_v55  ;;  %v323_v63 = vrot.slane %v283_v55, %v1124_v48 }
  0x4f   : > { %v1146_v1 = vmul.f32 %v494_v56, %v283_v55  ;;  %v412_v2 = vrot.slane %v1137_v58, %v1124_v48  ;;  %v408_v10 = vrot.slane %v1137_v58, %v1121_v46  ;;  %v520_v13 = vrot.slane %v1164_v11, %v1124_v48 }
  0x50   : > { %324 = vrot.lane.b32.xlu0 %v319_v59, %s959_s15  ;;  %v392_v3 = vrot.slane %v1140_v60, %v1121_v46  ;;  %v446_v5 = vrot.slane %v1142_v61, %v1121_v46  ;;  %v396_v6 = vrot.slane %v1140_v60, %v1124_v48  ;;  %v450_v7 = vrot.slane %v1142_v61, %v1124_v48 }
  0x51   : > { %v500_v8 = vrot.slane %v1146_v1, %v1121_v46  ;;  %v504_v9 = vrot.slane %v1146_v1, %v1124_v48  ;;  %v516_v14 = vrot.slane %v1164_v11, %v1121_v46  ;;  %v462_v16 = vrot.slane %v1171_v15, %v1121_v46 }
  0x52   : > { %346 = vrot.lane.b32.xlu1 %v343_v57, %s959_s15  ;;  %v466_v17 = vrot.slane %v1171_v15, %v1124_v48  ;;  %v526_v51 = vstv %s1194_s5  ;;  %v424_v56 = vstv %s1200_s17 }
  0x54   : > { %326 = vrot.lane.b32.xlu0 %v323_v63, %s959_s15  ;;  %s739_s15 = sshll.u32 %s944_s12, 5  ;;  %s963_s12 = smov [#allocation9]  }
  0x55   : > { %s607_s23 = scalar_lea.hbm %s1337_s2, %s739_s15  ;;  %s872_s30 = sshll.u32 %s963_s12, 4  ;;  %s873_s30 = int_to_ptr.vmem [resolvable:$false] %s872_s30 }
  0x56   : > { %356 = vrot.lane.b32.xlu1 %v323_v63, %s960_s16  ;;  %s874_s3 = scalar_lea.vmem %s873_s30, 64 }
  0x58   : > { %354 = vrot.lane.b32.xlu0 %v319_v59, %s960_s16 }
  0x5a   : > { %367 = vrot.lane.b32.xlu1 %v343_v57, %s960_s16 }
  0x5c   : > { %365 = vrot.lane.b32.xlu0 %v339_v54, %s960_s16  ;;  %s187_s16 = scalar_lea.vmem [#allocation9], %s713_s8 }
  0x5d   : > { %s609_s18 = sshll.u32 %s187_s16, 4  ;;  %s610_s18 = int_to_ptr.vmem [resolvable:$true] %s609_s18 }
  0x5e   : > { %s868_s29 = scalar_lea.vmem %s610_s18, 32  ;;  %p875_p9 = scmp.lt.s32.totalorder %s610_s18, %s873_s30 }
  0x5f   : > { %p869_p1 = scmp.ne.s32.totalorder %s610_s18, %s868_s29  ;;  %p876_p3 = scmp.lt.s32.totalorder %s874_s3, %s868_s29 }
  0x61   : > { %p870_p6 = pnand %p869_p1, %p1357_p4  ;;  %p877_p5 = por %p876_p3, %p875_p9 }
  0x63   : > { %p871_p8 = pneg %p870_p6 }
  0x65   : > { %p878_p7 = pnand %p877_p5, %p871_p8 }
  0xc0   : > { %v345_v25 = vpop.permute.xlu1 %344 }
  0xc1   : > { %v351_v26 = vsel %vm328_vm2, 0.0, %v345_v25 }
  0xc2   : > { %v352_v28 = vsel %vm1196_vm3, %v351_v26, 0.0  ;;  %v325_v31 = vpop.permute.xlu0 %324 }
  0xc3   : > { %v381_v33 = vmul.f32 %v380_v22, %v352_v28  ;;  %v435_v34 = vmul.f32 %v434_v23, %v352_v28  ;;  %v489_v35 = vmul.f32 %v488_v24, %v352_v28  ;;  %v332_v37 = vsel %vm328_vm2, 0.0, %v325_v31 }
  0xc4   : > { %v333_v38 = vsel %vm1196_vm3, %v332_v37, 0.0  ;;  %v347_v39 = vpop.permute.xlu1 %346 }
  0xc5   : > { %v377_v42 = vmul.f32 %v376_v27, %v333_v38  ;;  %v431_v43 = vmul.f32 %v430_v29, %v333_v38  ;;  %v485_v44 = vmul.f32 %v484_v30, %v333_v38  ;;  %v348_v45 = vsel %vm328_vm2, %v345_v25, %v347_v39 }
  0xc6   : > { %v353_v47 = vsel %vm1211_vm4, %v348_v45, 0.0  ;;  %v327_v49 = vpop.permute.xlu0 %326 }
  0xc7   : > { %v383_v53 = vadd.f32 %v381_v33, %v377_v42  ;;  %v437_v54 = vadd.f32 %v435_v34, %v431_v43  ;;  %v491_v55 = vadd.f32 %v489_v35, %v485_v44  ;;  %v382_v57 = vmul.f32 %v380_v22, %v353_v47 }
  0xc8   : > { %v436_v59 = vmul.f32 %v434_v23, %v353_v47  ;;  %v490_v62 = vmul.f32 %v488_v24, %v353_v47  ;;  %v329_v63 = vsel %vm328_vm2, %v325_v31, %v327_v49  ;;  %v357_v12 = vpop.permute.xlu1 %356  ;;  %v532_v34 = vstv %s1226_s21 }
  0xc9   : > { %v399_v18 = vadd.f32 %v392_v3, %v383_v53  ;;  %v453_v19 = vadd.f32 %v446_v5, %v437_v54  ;;  %v507_v20 = vadd.f32 %v500_v8, %v491_v55  ;;  %v334_v0 = vsel %vm1211_vm4, %v329_v63, 0.0 }
  0xca   : > { %v378_v21 = vmul.f32 %v376_v27, %v334_v0  ;;  %v432_v22 = vmul.f32 %v430_v29, %v334_v0  ;;  %v486_v23 = vmul.f32 %v484_v30, %v334_v0  ;;  %v362_v24 = vsel %vm358_vm6, %v357_v12, 0.0  ;;  %v355_v25 = vpop.permute.xlu0 %354 }
  0xcb   : > { %v364_v3 = vsel %vm1218_vm5, %v362_v24, 0.0  ;;  %v359_v26 = vsel %vm358_vm6, %v355_v25, %v357_v12  ;;  %v415_v5 = vadd.f32 %v408_v10, %v399_v18  ;;  %v523_v8 = vadd.f32 %v516_v14, %v507_v20 }
  0xcc   : > { %v384_v27 = vadd.f32 %v382_v57, %v378_v21  ;;  %v438_v28 = vadd.f32 %v436_v59, %v432_v22  ;;  %v492_v29 = vadd.f32 %v490_v62, %v486_v23  ;;  %v478_v30 = vstv %s1223_s19  ;;  %v368_v31 = vpop.permute.xlu1 %367 }
  0xcd   : > { %v420_v32 = vmul.f32 %v418_v41, %v364_v3  ;;  %v363_v33 = vsel %vm1232_vm7, %v359_v26, 0.0  ;;  %v372_v35 = vsel %vm358_vm6, %v368_v31, 0.0  ;;  %v528_v42 = vmul.f32 %v526_v51, %v364_v3 }
  0xce   : > { %v400_v10 = vadd.f32 %v396_v6, %v384_v27  ;;  %v454_v14 = vadd.f32 %v450_v7, %v438_v28  ;;  %v508_v37 = vadd.f32 %v504_v9, %v492_v29  ;;  %v419_v38 = vmul.f32 %v418_v41, %v363_v33  ;;  %v366_v39 = vpop.permute.xlu0 %365 }
  0xcf   : > { %v527_v43 = vmul.f32 %v526_v51, %v363_v33  ;;  %v374_v44 = vsel %vm1218_vm5, %v372_v35, 0.0  ;;  %v369_v45 = vsel %vm358_vm6, %v366_v39, %v368_v31  ;;  %v473_v47 = vmul.f32 %v472_v50, %v363_v33 }
  0xd0   : > { %v426_v60 = vmul.f32 %v424_v56, %v374_v44  ;;  %v534_v6 = vmul.f32 %v532_v34, %v374_v44  ;;  %v373_v61 = vsel %vm1232_vm7, %v369_v45, 0.0  ;;  %v416_v1 = vadd.f32 %v412_v2, %v400_v10 }
  0xd1   : > { %v425_v7 = vmul.f32 %v424_v56, %v373_v61  ;;  %v479_v49 = vmul.f32 %v478_v30, %v373_v61  ;;  %v533_v53 = vmul.f32 %v532_v34, %v373_v61  ;;  %v421_v9 = vadd.f32 %v419_v38, %v415_v5 }
  0xd2   : > { %v524_v40 = vadd.f32 %v520_v13, %v508_v37  ;;  %v529_v41 = vadd.f32 %v527_v43, %v523_v8  ;;  %v469_v51 = vadd.f32 %v462_v16, %v453_v19  ;;  %v474_v54 = vmul.f32 %v472_v50, %v364_v3 }
  0xd3   : > { %v480_v52 = vmul.f32 %v478_v30, %v374_v44  ;;  %v422_v55 = vadd.f32 %v420_v32, %v416_v1  ;;  %v470_v56 = vadd.f32 %v466_v17, %v454_v14  ;;  %v427_v57 = vadd.f32 %v425_v7, %v421_v9 }
  0xd4   : > { %v530_v58 = vadd.f32 %v528_v42, %v524_v40  ;;  %v535_v2 = vadd.f32 %v533_v53, %v529_v41  ;;  %v475_v59 = vadd.f32 %v473_v47, %v469_v51 }
  0xd5   : > { %v428_v62 = vadd.f32 %v426_v60, %v422_v55  ;;  %v476_v63 = vadd.f32 %v474_v54, %v470_v56  ;;  %539 = vrot.lane.b32.xlu0 %v427_v57, %s961_s6 }
  0xd6   : > { %v536_v11 = vadd.f32 %v534_v6, %v530_v58  ;;  %v481_v13 = vadd.f32 %v479_v49, %v475_v59 }
  0xd7   : > { %541 = vrot.lane.b32.xlu1 %v428_v62, %s961_s6  ;;  %v482_v46 = vadd.f32 %v480_v52, %v476_v63 }
  0xd9   : > { %552 = vrot.lane.b32.xlu0 %v535_v2, %s962_s7 }
  0xdb   : > { %554 = vrot.lane.b32.xlu1 %v536_v11, %s962_s7 }
 0x147   : > { %v540_v16 = vpop.permute.xlu0 %539 }
 0x148   : > { %v547_v15 = vsel %vm543_vm8, 0.0, %v540_v16 }
 0x149   : > { %v542_v50 = vpop.permute.xlu1 %541  ;;  %v548_v12 = vadd.f32 %v547_v15, %v481_v13 }
 0x14a   : > { %v544_v48 = vsel %vm543_vm8, %v540_v16, %v542_v50 }
 0x14b   : > { %v553_v17 = vpop.permute.xlu0 %552  ;;  %v549_v18 = vadd.f32 %v544_v48, %v482_v46 }
 0x14d   : > { %v555_v19 = vpop.permute.xlu1 %554 }
 0x14e   : > { %v560_v20 = vsel %vm556_vm9, %v555_v19, 0.0  ;;  %v557_v0 = vsel %vm556_vm9, %v553_v17, %v555_v19 }
 0x14f   : > { %v562_v21 = vadd.f32 %v560_v20, %v549_v18  ;;  %v561_v22 = vadd.f32 %v557_v0, %v548_v12 }
 0x151   : > { %v732_v23 = vmul.f32 -1.442695, %v562_v21  ;;  %v731_v24 = vmul.f32 -1.442695, %v561_v22 }
 0x153   : > { %821 = vpow2.f32 %v732_v23 }
 0x154   : > { %823 = vpow2.f32 %v731_v24 }
 0x160   : > { %v822_v25 = vpop.eup %821 }
 0x161   : > { %v824_v3 = vpop.eup %823  ;;  %v570_v26 = vadd.f32 1.0, %v822_v25 }
 0x162   : > { %v569_v5 = vadd.f32 1.0, %v824_v3 }
 0x163   : > { %825 = vrcp.f32 %v570_v26 }
 0x164   : > { %827 = vrcp.f32 %v569_v5 }
 0x170   : > { %v826_v8 = vpop.eup %825 }
 0x171   : > { %v828_v27 = vpop.eup %827 }
 0x172   : > { %v577_v28 = vcombine.low %v828_v27, %v826_v8 }
 0x174   : > { %v584_v29 = vrot.slane %v577_v28, %v1108_v36 }
 0x176   : > { %v591_v30 = vrot.slane %v584_v29, %v1108_v36 }
 0x178   : > { %593 = vst.msk [vmem:[%s187_s16] sm:$0x3] %vm1099_vm1, %v591_v30 }
 0x179   : > { %881 = shalt.err (!%p878_p7)
}
 0x17a   : > { %s882_s5 = scalar_lea.hbm %s607_s23, 32  ;;  %s886_s19 = scalar_lea.hbm %s1337_s2, 64 }
 0x17b   : > { %p883_p2 = scmp.ne.s32.totalorder %s607_s23, %s882_s5  ;;  %p887_p13 = scmp.lt.s32.totalorder %s607_s23, %s1337_s2 }
 0x17c   : > { %p888_p0 = scmp.lt.s32.totalorder %s886_s19, %s882_s5 }
 0x17d   : > { %p884_p11 = pnand %p883_p2, %p1357_p4 }
 0x17e   : > { %p889_p10 = por %p888_p0, %p887_p13 }
 0x17f   : > { %p885_p12 = pneg %p884_p11 }
 0x181   : > { %p890_p1 = pnand %p889_p10, %p885_p12 }
 0x183   : > { %893 = shalt.err (!%p890_p1)
}
 0x184   : > { %746 = dma.vmem_to_hbm [thread:$0]  (%p1357_p4), %s610_s18, 32, %s607_s23, %s595_s26  }
 0x185 PF: > { %s621_s7 = sand.u32 1, %s932_s9   ;;  %p1358_p6 = scmp.ne.s32.totalorder %s1342_s20, 0 }
 0x186   : > { %p1359_p8 = scmp.ge.s32.totalorder %s952_s14, 2  ;;  %s622_s8 = scalar_lea.sflag [#allocation6], %s621_s7 }
 0x188   : > { %p757_p9 = pnand %p1359_p8, %p1358_p6 }
 0x18a   : > { %p758_p3 = pneg %p757_p9 }
 0x18c   : > { %927 = dma.done.wait (%p758_p3), %s622_s8, 32  }
 0x18d   : > { %929 = vsyncadd (%p758_p3), %s622_s8, 4294967264  ;;  %s19_s14 = sadd.s32 1, %s952_s14   ;;  %s1360_s9 = smov %s936_s10 }
 0x18e   : > { %p16_p5 = scmp.ge.s32.totalorder %s19_s14, 4   ;;  %s1361_s10 = smov %s940_s11 }
 0x18f   : > { %s1362_s11 = smov %s1067_s4  ;;  %s1363_s12 = smov %s948_s13 }
 0x190   : > { %s1364_s13 = smov %s1366_s22  ;;  %18 = sbr.rel (!%p16_p5) target bundleno = 7 (0x7), region = 87 }
 0x195   :  { %627 = vsyncpa [#allocation5], 1 }
 0x196   :  { %629 = vsyncpa [#allocation5 + $0x1], 1 }
 0x197   :  { %630 = vsyncpa [#allocation6], 1 }
 0x198   :  { %632 = vsyncpa [#allocation6 + $0x1], 1 }
 0x199   :  { %633 = vsyncpa [#allocation7], 1 }
 0x19a   :  { %635 = vsyncpa [#allocation7 + $0x1], 1 }

</bundles_post_ra>
